<compile_context>
chip_gen: v7x
topology: tpu7x:2x2x1
jax: 0.10.0
libtpu: 0.0.40
codegen_flags: <defaults>
</compile_context>

<pallas_src>
import jax
import jax.numpy as jnp
from jax.experimental import pallas as pl
from jax.experimental.pallas import tpu as pltpu


def _round_up(x, m):
    return ((x + m - 1) // m) * m


# ------------------------------- kernels ----------------------------------


def _mlp_body(x, w1, b1, w2, b2):
    """Two fused Linear(+bias) -> ReLU layers.

    MXU matmuls with f32 accumulation; the intermediate `h` never leaves
    VMEM/vregs.  ReLU + bias run on the VPU as the matmul epilogue.
    """
    h = jnp.dot(x, w1, preferred_element_type=jnp.float32)
    h = jnp.maximum(h + b1, 0.0)
    y = jnp.dot(h, w2, preferred_element_type=jnp.float32)
    y = jnp.maximum(y + b2, 0.0)
    return h, y


def _fused_mlp_kernel(x_ref, w1_ref, b1_ref, w2_ref, b2_ref, o1_ref, o2_ref):
    """Stores both per-layer outputs (full MLP_Block.forward semantics)."""
    h, y = _mlp_body(x_ref[...], w1_ref[...], b1_ref[...], w2_ref[...], b2_ref[...])
    o1_ref[...] = h.astype(o1_ref.dtype)
    o2_ref[...] = y.astype(o2_ref.dtype)


def _fused_mlp_final_kernel(x_ref, w1_ref, b1_ref, w2_ref, b2_ref, o2_ref):
    """Stores only the final layer output (halves output writeback traffic)."""
    _, y = _mlp_body(x_ref[...], w1_ref[...], b1_ref[...], w2_ref[...], b2_ref[...])
    o2_ref[...] = y.astype(o2_ref.dtype)


# ------------------------------ parameters --------------------------------


def init_mlp_params(key, input_dim, hidden_units):
    """PyTorch nn.Linear-style init: U(-1/sqrt(fan_in), 1/sqrt(fan_in)).

    Weights stored as (in, out) = transpose of PyTorch's (out, in).
    Biases stored pre-shaped as (1, out) so they broadcast in-kernel for free.
    """
    params = []
    dims = [input_dim] + list(hidden_units)
    for idx in range(len(dims) - 1):
        fan_in, fan_out = dims[idx], dims[idx + 1]
        key, kw, kb = jax.random.split(key, 3)
        bound = 1.0 / (fan_in ** 0.5)
        w = jax.random.uniform(kw, (fan_in, fan_out), jnp.float32, -bound, bound)
        b = jax.random.uniform(kb, (1, fan_out), jnp.float32, -bound, bound)
        params.append((w, b))
    return params


def stack_params(per_tower_params):
    """Stack N towers' params along a leading axis for the stacked kernel."""
    w1s = jnp.stack([p[0][0] for p in per_tower_params])
    b1s = jnp.stack([p[0][1] for p in per_tower_params])
    w2s = jnp.stack([p[1][0] for p in per_tower_params])
    b2s = jnp.stack([p[1][1] for p in per_tower_params])
    return (w1s, b1s), (w2s, b2s)


# ------------------------------- wrappers ----------------------------------


def mlp_block_forward(params, x, *, return_hidden=True, max_batch_tile=512):
    """Mirrors MLP_Block.forward: returns the list of each layer's output.

    Single fused pallas_call, batch-tiled grid (weights resident), "parallel"
    batch axis so v7x can shard it across its 2 TensorCores.  If
    return_hidden=False, only the final layer output is computed/stored.
    """
    (w1, b1), (w2, b2) = params
    B, D_in = x.shape
    H1 = w1.shape[1]
    H2 = w2.shape[1]

    # Batch tile: multiple of 8 (sublane), capped so VMEM stays tiny on every
    # generation (f32 (512,32) tile ~64 KiB, double-buffered well under the
    # 16/32 MiB scoped-VMEM defaults on v5e/v6e/v7x).
    TB = min(max_batch_tile, _round_up(B, 8))
    B_pad = _round_up(B, TB)
    if B_pad != B:  # only for ragged batch sizes; not hit in the demo
        x = jnp.pad(x, ((0, B_pad - B), (0, 0)))
    grid = (B_pad // TB,)

    x_spec = pl.BlockSpec((TB, D_in), lambda i: (i, 0))
    w1_spec = pl.BlockSpec((D_in, H1), lambda i: (0, 0))   # weights resident
    b1_spec = pl.BlockSpec((1, H1), lambda i: (0, 0))
    w2_spec = pl.BlockSpec((H1, H2), lambda i: (0, 0))
    b2_spec = pl.BlockSpec((1, H2), lambda i: (0, 0))
    o1_spec = pl.BlockSpec((TB, H1), lambda i: (i, 0))
    o2_spec = pl.BlockSpec((TB, H2), lambda i: (i, 0))

    flops = 2 * B_pad * (D_in * H1 + H1 * H2)
    out_bytes = 4 * B_pad * ((H1 + H2) if return_hidden else H2)
    bytes_accessed = 4 * (B_pad * D_in + D_in * H1 + H1 + H1 * H2 + H2) + out_bytes
    cost = pl.CostEstimate(flops=flops, transcendentals=0,
                           bytes_accessed=bytes_accessed)
    cparams = pltpu.CompilerParams(dimension_semantics=("parallel",))
    in_specs = [x_spec, w1_spec, b1_spec, w2_spec, b2_spec]

    if return_hidden:
        o1, o2 = pl.pallas_call(
            _fused_mlp_kernel,
            out_shape=(jax.ShapeDtypeStruct((B_pad, H1), x.dtype),
                       jax.ShapeDtypeStruct((B_pad, H2), x.dtype)),
            grid=grid,
            in_specs=in_specs,
            out_specs=(o1_spec, o2_spec),
            compiler_params=cparams,
            cost_estimate=cost,
        )(x, w1, b1, w2, b2)
        outs = [o1, o2]
    else:
        o2 = pl.pallas_call(
            _fused_mlp_final_kernel,
            out_shape=jax.ShapeDtypeStruct((B_pad, H2), x.dtype),
            grid=grid,
            in_specs=in_specs,
            out_specs=o2_spec,
            compiler_params=cparams,
            cost_estimate=cost,
        )(x, w1, b1, w2, b2)
        outs = [o2]

    if B_pad != B:
        outs = [o[:B] for o in outs]
    return outs


def mlp_block_forward_stacked(stacked_params, xs, *, max_batch_tile=512):
    """N independent MLP_Block towers in ONE pallas_call (launch amortization).

    xs: (N, B, D_in); stacked weights (N, D_in, H1)/(N, 1, H1)/... .
    Grid = (towers, batch tiles); per-tower weights are selected by the tower
    program_id, the leading axis is squeezed so the same 2-D kernel is reused.
    Returns [hidden (N, B, H1), output (N, B, H2)].
    """
    (w1s, b1s), (w2s, b2s) = stacked_params
    N, B, D_in = xs.shape
    H1 = w1s.shape[2]
    H2 = w2s.shape[2]

    TB = min(max_batch_tile, _round_up(B, 8))
    B_pad = _round_up(B, TB)
    if B_pad != B:
        xs = jnp.pad(xs, ((0, 0), (0, B_pad - B), (0, 0)))
    grid = (N, B_pad // TB)

    # Leading (tower) dim is squeezed out of the kernel refs via block dim None.
    x_spec = pl.BlockSpec((None, TB, D_in), lambda n, i: (n, i, 0))
    w1_spec = pl.BlockSpec((None, D_in, H1), lambda n, i: (n, 0, 0))
    b1_spec = pl.BlockSpec((None, 1, H1), lambda n, i: (n, 0, 0))
    w2_spec = pl.BlockSpec((None, H1, H2), lambda n, i: (n, 0, 0))
    b2_spec = pl.BlockSpec((None, 1, H2), lambda n, i: (n, 0, 0))
    o1_spec = pl.BlockSpec((None, TB, H1), lambda n, i: (n, i, 0))
    o2_spec = pl.BlockSpec((None, TB, H2), lambda n, i: (n, i, 0))

    flops = 2 * N * B_pad * (D_in * H1 + H1 * H2)
    bytes_accessed = 4 * N * (B_pad * D_in + D_in * H1 + H1 + H1 * H2 + H2
                              + B_pad * H1 + B_pad * H2)
    cost = pl.CostEstimate(flops=flops, transcendentals=0,
                           bytes_accessed=bytes_accessed)

    o1s, o2s = pl.pallas_call(
        _fused_mlp_kernel,
        out_shape=(jax.ShapeDtypeStruct((N, B_pad, H1), xs.dtype),
                   jax.ShapeDtypeStruct((N, B_pad, H2), xs.dtype)),
        grid=grid,
        in_specs=[x_spec, w1_spec, b1_spec, w2_spec, b2_spec],
        out_specs=(o1_spec, o2_spec),
        compiler_params=pltpu.CompilerParams(
            dimension_semantics=("parallel", "parallel")),
        cost_estimate=cost,
    )(xs, w1s, b1s, w2s, b2s)

    if B_pad != B:
        o1s, o2s = o1s[:, :B], o2s[:, :B]
    return [o1s, o2s]


def mlp_block_reference(params, x):
    """Pure-JAX reference for correctness check."""
    outputs = []
    for (w, b) in params:
        x = jnp.maximum(x @ w + b, 0.0)
        outputs.append(x)
    return outputs


# --------------------------------- demo ------------------------------------


if __name__ == "__main__":
    key = jax.random.PRNGKey(0)
    key, kx = jax.random.split(key)

    batch = 8
    input_dim = 16
    hidden_units = [32, 32]

    x = jax.random.normal(kx, (batch, input_dim), jnp.float32)
    params = init_mlp_params(key, input_dim, hidden_units)

    # 1) Full module semantics: list of both layers' outputs, true widths.
    outs = mlp_block_forward(params, x)
    outs = [jax.block_until_ready(o) for o in outs]
    refs = mlp_block_reference(params, x)
    for o, r in zip(outs, refs):
        assert o.shape == r.shape and o.dtype == r.dtype
        assert jnp.allclose(o, r, atol=1e-5, rtol=1e-5), "mismatch vs reference"

    # 2) Final-output-only path (drops the hidden-layer store).
    (final,) = mlp_block_forward(params, x, return_hidden=False)
    jax.block_until_ready(final)
    assert jnp.allclose(final, refs[-1], atol=1e-5, rtol=1e-5), "final-only mismatch"

    # 3) Stacked multi-tower path (amortizes launch overhead across N blocks).
    n_towers = 4
    tower_keys = jax.random.split(jax.random.PRNGKey(1), n_towers)
    tower_params = [init_mlp_params(k, input_dim, hidden_units) for k in tower_keys]
    stacked = stack_params(tower_params)
    xs = jax.random.normal(jax.random.PRNGKey(2), (n_towers, batch, input_dim),
                           jnp.float32)
    s_outs = mlp_block_forward_stacked(stacked, xs)
    s_outs = [jax.block_until_ready(o) for o in s_outs]
    for t in range(n_towers):
        t_refs = mlp_block_reference(tower_params[t], xs[t])
        for o, r in zip(s_outs, t_refs):
            assert jnp.allclose(o[t], r, atol=1e-5, rtol=1e-5), "stacked mismatch"

    print("KERNEL_OK")
</pallas_src>

<mosaic_0001>
module attributes {stable_mosaic.version = 11 : i64} {
  func.func @_fused_mlp_kernel(%arg0: i32, %arg1: memref<8x16xf32, #tpu.memory_space<vmem>>, %arg2: memref<16x32xf32, #tpu.memory_space<vmem>>, %arg3: memref<1x32xf32, #tpu.memory_space<vmem>>, %arg4: memref<32x32xf32, #tpu.memory_space<vmem>>, %arg5: memref<1x32xf32, #tpu.memory_space<vmem>>, %arg6: memref<8x32xf32, #tpu.memory_space<vmem>>, %arg7: memref<8x32xf32, #tpu.memory_space<vmem>>) attributes {dimension_semantics = [#tpu.dimension_semantics<parallel>], iteration_bounds = array<i64: 1>, scalar_prefetch = 0 : i64, scratch_operands = 0 : i64, tpu.core_type = #tpu.core_type<tc>, window_params = [{transform_indices = @transform_0, window_bounds = array<i64: 8, 16>}, {pipeline_mode = #tpu.pipeline_mode<synchronous>, transform_indices = @transform_1, window_bounds = array<i64: 16, 32>}, {pipeline_mode = #tpu.pipeline_mode<synchronous>, transform_indices = @transform_2, window_bounds = array<i64: 1, 32>}, {pipeline_mode = #tpu.pipeline_mode<synchronous>, transform_indices = @transform_3, window_bounds = array<i64: 32, 32>}, {pipeline_mode = #tpu.pipeline_mode<synchronous>, transform_indices = @transform_4, window_bounds = array<i64: 1, 32>}, {transform_indices = @transform_5, window_bounds = array<i64: 8, 32>}, {transform_indices = @transform_6, window_bounds = array<i64: 8, 32>}]} {
    %c0 = arith.constant 0 : index
    %c0_0 = arith.constant 0 : index
    %0 = vector.load %arg1[%c0, %c0_0] : memref<8x16xf32, #tpu.memory_space<vmem>>, vector<8x16xf32>
    %c0_1 = arith.constant 0 : index
    %c0_2 = arith.constant 0 : index
    %1 = vector.load %arg2[%c0_1, %c0_2] : memref<16x32xf32, #tpu.memory_space<vmem>>, vector<16x32xf32>
    %c0_3 = arith.constant 0 : index
    %c0_4 = arith.constant 0 : index
    %2 = vector.load %arg3[%c0_3, %c0_4] : memref<1x32xf32, #tpu.memory_space<vmem>>, vector<1x32xf32>
    %c0_5 = arith.constant 0 : index
    %c0_6 = arith.constant 0 : index
    %3 = vector.load %arg4[%c0_5, %c0_6] : memref<32x32xf32, #tpu.memory_space<vmem>>, vector<32x32xf32>
    %c0_7 = arith.constant 0 : index
    %c0_8 = arith.constant 0 : index
    %4 = vector.load %arg5[%c0_7, %c0_8] : memref<1x32xf32, #tpu.memory_space<vmem>>, vector<1x32xf32>
    %cst = arith.constant dense<0.000000e+00> : vector<8x32xf32>
    %5 = tpu.matmul %0, %1, %cst {dimension_numbers = #tpu.dot_dimension_numbers<[1], [0], [0], [1], [0, 0, 1, 1], [], []>} : vector<8x16xf32>, vector<16x32xf32>, vector<8x32xf32> -> vector<8x32xf32>
    %6 = vector.broadcast %2 : vector<1x32xf32> to vector<8x32xf32>
    %7 = arith.addf %5, %6 : vector<8x32xf32>
    %cst_9 = arith.constant 0.000000e+00 : f32
    %8 = vector.broadcast %cst_9 : f32 to vector<8x32xf32>
    %9 = arith.maximumf %7, %8 : vector<8x32xf32>
    %cst_10 = arith.constant dense<0.000000e+00> : vector<8x32xf32>
    %10 = tpu.matmul %9, %3, %cst_10 {dimension_numbers = #tpu.dot_dimension_numbers<[1], [0], [0], [1], [0, 0, 1, 1], [], []>} : vector<8x32xf32>, vector<32x32xf32>, vector<8x32xf32> -> vector<8x32xf32>
    %11 = vector.broadcast %4 : vector<1x32xf32> to vector<8x32xf32>
    %12 = arith.addf %10, %11 : vector<8x32xf32>
    %cst_11 = arith.constant 0.000000e+00 : f32
    %13 = vector.broadcast %cst_11 : f32 to vector<8x32xf32>
    %14 = arith.maximumf %12, %13 : vector<8x32xf32>
    %c0_12 = arith.constant 0 : index
    %c0_13 = arith.constant 0 : index
    %15 = vector.load %arg6[%c0_12, %c0_13] : memref<8x32xf32, #tpu.memory_space<vmem>>, vector<8x32xf32>
    tpu.vector_store %arg6[%c0_12, %c0_13], %9 {strides = array<i32>} : memref<8x32xf32, #tpu.memory_space<vmem>>, vector<8x32xf32>,
    %c0_14 = arith.constant 0 : index
    %c0_15 = arith.constant 0 : index
    %16 = vector.load %arg7[%c0_14, %c0_15] : memref<8x32xf32, #tpu.memory_space<vmem>>, vector<8x32xf32>
    tpu.vector_store %arg7[%c0_14, %c0_15], %14 {strides = array<i32>} : memref<8x32xf32, #tpu.memory_space<vmem>>, vector<8x32xf32>,
    return
  }
  func.func @transform_0(%arg0: i32) -> (i32, i32) {
    %c0_i32 = arith.constant 0 : i32
    %c0_i32_0 = arith.constant 0 : i32
    return %arg0, %c0_i32 : i32, i32
  }
  func.func @transform_1(%arg0: i32) -> (i32, i32) {
    %c0_i32 = arith.constant 0 : i32
    %c0_i32_0 = arith.constant 0 : i32
    %c0_i32_1 = arith.constant 0 : i32
    return %c0_i32, %c0_i32_0 : i32, i32
  }
  func.func @transform_2(%arg0: i32) -> (i32, i32) {
    %c0_i32 = arith.constant 0 : i32
    %c0_i32_0 = arith.constant 0 : i32
    %c0_i32_1 = arith.constant 0 : i32
    return %c0_i32, %c0_i32_0 : i32, i32
  }
  func.func @transform_3(%arg0: i32) -> (i32, i32) {
    %c0_i32 = arith.constant 0 : i32
    %c0_i32_0 = arith.constant 0 : i32
    %c0_i32_1 = arith.constant 0 : i32
    return %c0_i32, %c0_i32_0 : i32, i32
  }
  func.func @transform_4(%arg0: i32) -> (i32, i32) {
    %c0_i32 = arith.constant 0 : i32
    %c0_i32_0 = arith.constant 0 : i32
    %c0_i32_1 = arith.constant 0 : i32
    return %c0_i32, %c0_i32_0 : i32, i32
  }
  func.func @transform_5(%arg0: i32) -> (i32, i32) {
    %c0_i32 = arith.constant 0 : i32
    %c0_i32_0 = arith.constant 0 : i32
    return %arg0, %c0_i32 : i32, i32
  }
  func.func @transform_6(%arg0: i32) -> (i32, i32) {
    %c0_i32 = arith.constant 0 : i32
    %c0_i32_0 = arith.constant 0 : i32
    return %arg0, %c0_i32 : i32, i32
  }
}

</mosaic_0001>

<bundles_post_ra>
// kernel: tpu_custom_call.1
= control target key start
LH: loop header
LB: loop body
LE: loop exit
PB: predicated region body
PF: predicated region fallthrough
CT: control target
= control target key end

     0   :  { %12 = vsyncpa [#allocation3], 0  ;;  %s553_s0 = inlined_call_operand.hbm [shape: f32[8,16], index: 0, kind: input, shape index: {}]   ;;  %s554_s1 = inlined_call_operand.hbm [shape: f32[16,32], index: 1, kind: input, shape index: {}]   ;;  %s555_s2 = inlined_call_operand.vmem [shape: f32[1,32], index: 2, kind: input, shape index: {}]   ;;  %s556_s3 = inlined_call_operand.hbm [shape: f32[32,32], index: 3, kind: input, shape index: {}]   ;;  %s557_s4 = inlined_call_operand.vmem [shape: f32[1,32], index: 4, kind: input, shape index: {}]   ;;  %s558_s5 = inlined_call_operand.hbm [shape: f32[8,32], index: 5, kind: output, shape index: {0}]   ;;  %s559_s6 = inlined_call_operand.hbm [shape: f32[8,32], index: 6, kind: output, shape index: {1}]  }
   0x1   :  { %13 = vsyncpa [#allocation6], 0 }
   0x2   :  { %14 = vsyncpa [#allocation4], 0 }
   0x3   :  { %15 = vsyncpa [#allocation10], 0  ;;  %s433_s21 = smov [#allocation5]   ;;  %s315_s25 = scalar_lea.hbm %s554_s1, 256 }
   0x4   :  { %s31_s22 = sshll.u32 %s433_s21, 4  ;;  %p316_p0 = scmp.ne.s32.totalorder %s554_s1, %s315_s25  ;;  %s32_s22 = int_to_ptr.vmem [resolvable:$true] %s31_s22 }
   0x5   :  { %p319_p1 = scmp.lt.u32.totalorder %s315_s25, %s554_s1 }
   0x7   :  { %p321_p2 = pnand %p319_p1, %p316_p0 }
   0x9   :  { %324 = shalt.err (!%p321_p2)
}
   0xa   :  { %s325_s30 = scalar_lea.vmem %s32_s22, 256  ;;  %p330_p4 = scmp.lt.s32.totalorder %s32_s22, %s32_s22 }
   0xb   :  { %p326_p3 = scmp.ne.s32.totalorder %s32_s22, %s325_s30  ;;  %p331_p5 = scmp.lt.s32.totalorder %s325_s30, %s325_s30 }
   0xd   :  { %p332_p6 = por %p331_p5, %p330_p4 }
   0xf   :  { %p333_p7 = pnand %p332_p6, %p326_p3 }
  0x11   :  { %336 = shalt.err (!%p333_p7)
}
  0x12   :  { %s434_s7 = smov 128   ;;  %s435_s8 = smov 8  }
  0x13   :  { %37 = dma.hbm_to_vmem [thread:$0]  %s554_s1, 256, %s32_s22, [#allocation6], %s434_s7, %s434_s7, %s435_s8  }
  0x14   :  { %s436_s11 = smov [#allocation2]   ;;  %s437_s13 = smov [#allocation7]  }
  0x15   :  { %s22_s12 = sshll.u32 %s436_s11, 4  ;;  %s45_s14 = sshll.u32 %s437_s13, 4  ;;  %s23_s12 = int_to_ptr.vmem [resolvable:$true] %s22_s12  ;;  %s46_s14 = int_to_ptr.vmem [resolvable:$true] %s45_s14 }
  0x16   :  { %s337_s17 = scalar_lea.hbm %s553_s0, 128 }
  0x17   :  { %p338_p8 = scmp.ne.s32.totalorder %s553_s0, %s337_s17  ;;  %p341_p9 = scmp.lt.u32.totalorder %s337_s17, %s553_s0 }
  0x19   :  { %p343_p10 = pnand %p341_p9, %p338_p8 }
  0x1b   :  { %346 = shalt.err (!%p343_p10)
}
  0x1c   :  { %s347_s1 = scalar_lea.vmem %s23_s12, 128  ;;  %p352_p12 = scmp.lt.s32.totalorder %s23_s12, %s23_s12 }
  0x1d   :  { %p348_p11 = scmp.ne.s32.totalorder %s23_s12, %s347_s1  ;;  %p353_p13 = scmp.lt.s32.totalorder %s347_s1, %s347_s1 }
  0x1f   :  { %p354_p0 = por %p353_p13, %p352_p12 }
  0x21   :  { %p355_p1 = pnand %p354_p0, %p348_p11 }
  0x23   :  { %358 = shalt.err (!%p355_p1)
}
  0x24   :  { %25 = dma.hbm_to_vmem [thread:$0]  %s553_s0, 128, %s23_s12, [#allocation3]  }
  0x25   :  { %s359_s26 = scalar_lea.hbm %s556_s3, 512 }
  0x26   :  { %p360_p2 = scmp.ne.s32.totalorder %s556_s3, %s359_s26  ;;  %p363_p3 = scmp.lt.u32.totalorder %s359_s26, %s556_s3 }
  0x28   :  { %p365_p4 = pnand %p363_p3, %p360_p2 }
  0x2a   :  { %368 = shalt.err (!%p365_p4)
}
  0x2b   :  { %s369_s9 = scalar_lea.vmem %s46_s14, 512  ;;  %p374_p6 = scmp.lt.s32.totalorder %s46_s14, %s46_s14 }
  0x2c   :  { %p370_p5 = scmp.ne.s32.totalorder %s46_s14, %s369_s9  ;;  %p375_p7 = scmp.lt.s32.totalorder %s369_s9, %s369_s9 }
  0x2e   :  { %p376_p8 = por %p375_p7, %p374_p6 }
  0x30   :  { %p377_p9 = pnand %p376_p8, %p370_p5 }
  0x32   :  { %380 = shalt.err (!%p377_p9)
}
  0x33   :  { %51 = dma.hbm_to_vmem [thread:$0]  %s556_s3, 512, %s46_s14, [#allocation6], %s434_s7, %s434_s7, %s435_s8  }
  0x34   :  { %425 = dma.done.wait [#allocation3], 128  }
  0x35   :  { %426 = vsyncadd [#allocation3], 4294967168 }
  0x36   :  { %427 = dma.done.wait [#allocation6], 768  }
  0x37   :  { %428 = vsyncadd [#allocation6], 4294966528  ;;  %v438_v0 = vmov 0.0|0.0   ;;  %vm439_vm0 = vmmov 0   ;;  %v440_v1 = vmov 0.0   ;;  %v64_v2 = vld [vmem:[#allocation5] sm:$0xff] }
  0x38   :  { %296 = vmatprep.subr.bf16.mxu0 %v438_v0  ;;  %282 = vmatprep.mubr.msk.f32.mxu0 %vm439_vm0, %v440_v1  ;;  %v65_v3 = vld [vmem:[#allocation5 + $0x8] sm:$0xff]  ;;  %v67_v5 = vld [vmem:[#allocation7] sm:$0xff]  ;;  %v68_v6 = vld [vmem:[#allocation7 + $0x8] sm:$0xff]  ;;  %vm78_vm1 = vcmask 130048   ;;  %vm159_vm2 = vcmask 261120   ;;  %s441_s8 = smov [#allocation8]  }
  0x39   :  { %299 = vmatprep.subr.bf16.mxu1 %v438_v0  ;;  %293 = vmatprep.mubr.msk.f32.mxu1 %vm439_vm0, %v440_v1  ;;  %v297_v4 = vpack.c.bf16 %v65_v3, %v64_v2  ;;  %v300_v7 = vpack.c.bf16 %v68_v6, %v67_v5  ;;  %v63_v8 = vld [vmem:[#allocation2] sm:$0xff]  ;;  %v69_v9 = vld [vmem:[#allocation7 + $0x10] sm:$0xff]  ;;  %v70_v10 = vld [vmem:[#allocation7 + $0x18] sm:$0xff]  ;;  %s242_s11 = sshll.u32 %s441_s8, 4  ;;  %s243_s11 = int_to_ptr.vmem [resolvable:$true] %s242_s11 }
  0x3a   :  { %v303_v11 = vpack.c.bf16 %v70_v10, %v69_v9  ;;  %v266_v12 = vld [vmem:[%s555_s2] ss:$0 sm:$0xff]  ;;  %s381_s12 = scalar_lea.vmem %s243_s11, 128  ;;  %p386_p11 = scmp.lt.s32.totalorder %s243_s11, %s243_s11 }
  0x3b   :  { %298 = vmatpush3.bf16.msra.mxu0 %v297_v4  ;;  %301 = vmatpush3.bf16.msra.mxu1 %v300_v7  ;;  %p382_p10 = scmp.ne.s32.totalorder %s243_s11, %s381_s12  ;;  %p387_p12 = scmp.lt.s32.totalorder %s381_s12, %s381_s12 }
  0x3c   :  { %302 = vmatprep.subr.bf16.mxu1 %v438_v0 }
  0x3d   :  { %p388_p13 = por %p387_p12, %p386_p11 }
  0x3e   :  { %283 = vmatmul.mubr.msk.f32.vlgmr.msra.gmra.mrb[0].mxu0 %vm78_vm1, %v63_v8 }
  0x3f   :  { %304 = vmatpush3.bf16.msra.mxu1 %v303_v11  ;;  %p389_p0 = pnand %p388_p13, %p382_p10 }
 0x111   :  { %v148_v13 = vpop.f32.mrb[0].mxu0 }
 0x112   :  { %v149_v14 = vadd.f32 %v266_v12, %v148_v13  ;;  %v284_v15 = vpop.f32.mrb[1].mxu0 }
 0x114   :  { %v152_v16 = vmax.f32 %v149_v14, 0.0 }
 0x116   :  { %294 = vmatmul.mubr.msk.f32.vlgmr.msra.gmra.mrb[0].mxu1 %vm159_vm2, %v152_v16  ;;  %234 = vst.msk [vmem:[#allocation8] sm:$0xff] %vm159_vm2, %v152_v16 }
 0x117   :  { %392 = shalt.err (!%p389_p0)
}
 0x118   :  { %s393_s14 = scalar_lea.hbm %s558_s5, 128 }
 0x119   :  { %p394_p1 = scmp.ne.s32.totalorder %s558_s5, %s393_s14  ;;  %p397_p2 = scmp.lt.u32.totalorder %s393_s14, %s558_s5 }
 0x11b   :  { %p399_p3 = pnand %p397_p2, %p394_p1 }
 0x11d   :  { %402 = shalt.err (!%p399_p3)
}
 0x11e   :  { %245 = dma.vmem_to_hbm [thread:$0]  %s243_s11, 128, %s558_s5, [#allocation4]   ;;  %v268_v17 = vld [vmem:[%s557_s4] ss:$0 sm:$0xff] }
 0x11f   :  { %s442_s22 = smov [#allocation9]  }
 0x120   :  { %s252_s23 = sshll.u32 %s442_s22, 4  ;;  %s253_s23 = int_to_ptr.vmem [resolvable:$true] %s252_s23 }
 0x121   :  { %s403_s24 = scalar_lea.vmem %s253_s23, 128  ;;  %p408_p5 = scmp.lt.s32.totalorder %s253_s23, %s253_s23 }
 0x122   :  { %p404_p4 = scmp.ne.s32.totalorder %s253_s23, %s403_s24  ;;  %p409_p6 = scmp.lt.s32.totalorder %s403_s24, %s403_s24 }
 0x124   :  { %p410_p7 = por %p409_p6, %p408_p5 }
 0x126   :  { %p411_p8 = pnand %p410_p7, %p404_p4 }
 0x1e9   :  { %v229_v18 = vpop.f32.mrb[0].mxu1 }
 0x1ea   :  { %v230_v19 = vadd.f32 %v268_v17, %v229_v18  ;;  %v295_v20 = vpop.f32.mrb[1].mxu1 }
 0x1ec   :  { %v233_v21 = vmax.f32 %v230_v19, 0.0 }
 0x1ee   :  { %235 = vst.msk [vmem:[#allocation9] sm:$0xff] %vm159_vm2, %v233_v21 }
 0x1ef   :  { %414 = shalt.err (!%p411_p8)
}
 0x1f0   :  { %s415_s4 = scalar_lea.hbm %s559_s6, 128 }
 0x1f1   :  { %p416_p9 = scmp.ne.s32.totalorder %s559_s6, %s415_s4  ;;  %p419_p10 = scmp.lt.u32.totalorder %s415_s4, %s559_s6 }
 0x1f3   :  { %p421_p11 = pnand %p419_p10, %p416_p9 }
 0x1f5   :  { %424 = shalt.err (!%p421_p11)
}
 0x1f6   :  { %255 = dma.vmem_to_hbm [thread:$0]  %s253_s23, 128, %s559_s6, [#allocation10]  }
 0x1f7   :  { %429 = dma.done.wait [#allocation4], 128  }
 0x1f8   :  { %430 = vsyncadd [#allocation4], 4294967168 }
 0x1f9   :  { %431 = dma.done.wait [#allocation10], 128  }
 0x1fa   :  { %432 = vsyncadd [#allocation10], 4294967168 }
 0x1fb   :  { %262 = vsyncpa [#allocation3], 1 }
 0x1fc   :  { %263 = vsyncpa [#allocation6], 1 }
 0x1fd   :  { %264 = vsyncpa [#allocation4], 1 }
 0x1fe   :  { %265 = vsyncpa [#allocation10], 1 }

</bundles_post_ra>
